<compile_context>
chip_gen: v7x
topology: tpu7x:2x2x1
jax: 0.10.0
libtpu: 0.0.40
codegen_flags: <defaults>
</compile_context>

<pallas_src>
import jax
import jax.numpy as jnp
from jax.experimental import pallas as pl
from jax.experimental.pallas import tpu as pltpu


def critic_mlp_kernel(x_ref,
                      w1_ref, b1_ref,
                      w2_ref, b2_ref,
                      w3_ref, b3_ref,
                      w4_ref, b4_ref,
                      out_ref):
    """Fused forward for one batch tile, feature-major (features x TB) everywhere.

    h1 = relu(W1 @ x  + b1)        (h1, TB)
    h2 = relu(W2 @ h1 + b2)        (h2, TB)
    h3 = relu(W3 @ h2 + b3)        (h3, TB)
    y  =       W4 @ h3 + b4        (1,  TB)   lane-dense output row
    """
    x = x_ref[...]                                                     # (in, TB)

    h = jnp.dot(w1_ref[...], x, preferred_element_type=jnp.float32) + b1_ref[...]
    h = jnp.maximum(h, 0.0)                                            # (h1, TB)

    h = jnp.dot(w2_ref[...], h, preferred_element_type=jnp.float32) + b2_ref[...]
    h = jnp.maximum(h, 0.0)                                            # (h2, TB)

    h = jnp.dot(w3_ref[...], h, preferred_element_type=jnp.float32) + b3_ref[...]
    h = jnp.maximum(h, 0.0)                                            # (h3, TB)

    y = jnp.dot(w4_ref[...], h, preferred_element_type=jnp.float32) + b4_ref[...]
    out_ref[...] = y.astype(out_ref.dtype)                             # (1, TB)


def _round_up(x, m):
    return ((x + m - 1) // m) * m


def critical_network_forward(state, params, *, max_batch_tile=8192):
    """Run the Pallas kernel.

    state:  (B, input_size) float32
    params: dict with w1..w4 stored PyTorch-style as (out_features, in_features),
            b1..b4 as (out_features, 1).
    Returns (B, 1) float32.
    """
    B, input_size = state.shape
    h1 = params["w1"].shape[0]
    h2 = params["w2"].shape[0]
    h3 = params["w3"].shape[0]
    output_size = params["w4"].shape[0]
    assert output_size == 1, "kernel specializes the value head to output_size == 1"

    # Adaptive tiling: big tiles to amortize per-step overhead, minimal padding waste,
    # and >=2 tiles when B is non-trivial so v7x's second TensorCore has work.
    num_tiles = pl.cdiv(B, max_batch_tile)
    if num_tiles == 1 and B > 256:
        num_tiles = 2
    tb = _round_up(pl.cdiv(B, num_tiles), 128)
    num_tiles = pl.cdiv(B, tb)
    b_pad = tb * num_tiles

    # Feature-major input stream: (input_size, b_pad), batch on the lane axis.
    x_t = jnp.transpose(state.astype(jnp.float32))                     # (in, B)
    if b_pad != B:
        x_t = jnp.pad(x_t, ((0, 0), (0, b_pad - B)))

    args = (x_t,
            params["w1"], params["b1"],
            params["w2"], params["b2"],
            params["w3"], params["b3"],
            params["w4"], params["b4"])

    resident = lambda i: (0, 0)                 # weights/biases: same block every step
    in_specs = [
        pl.BlockSpec((input_size, tb), lambda i: (0, i)),   # streamed batch tile
        pl.BlockSpec((h1, input_size), resident),
        pl.BlockSpec((h1, 1), resident),
        pl.BlockSpec((h2, h1), resident),
        pl.BlockSpec((h2, 1), resident),
        pl.BlockSpec((h3, h2), resident),
        pl.BlockSpec((h3, 1), resident),
        pl.BlockSpec((output_size, h3), resident),
        pl.BlockSpec((output_size, 1), resident),
    ]
    # Lane-dense output: each grid step writes a full (1, tb) row (unmasked stores).
    out_specs = pl.BlockSpec((1, tb), lambda i: (0, i))

    flops = 2 * b_pad * (input_size * h1 + h1 * h2 + h2 * h3 + h3 * output_size)
    weight_bytes = 4 * sum(int(params[k].size)
                           for k in ("w1", "b1", "w2", "b2", "w3", "b3", "w4", "b4"))
    bytes_accessed = b_pad * (input_size + output_size) * 4 + weight_bytes

    out = pl.pallas_call(
        critic_mlp_kernel,
        out_shape=jax.ShapeDtypeStruct((1, b_pad), jnp.float32),
        grid=(num_tiles,),
        in_specs=in_specs,
        out_specs=out_specs,
        compiler_params=pltpu.CompilerParams(
            dimension_semantics=("parallel",),      # shard batch tiles across v7x's 2 TCs
            vmem_limit_bytes=32 * 1024 * 1024,      # explicit, v7x(64 MiB)-safe budget
        ),
        cost_estimate=pl.CostEstimate(
            flops=flops, transcendentals=0, bytes_accessed=bytes_accessed),
    )(*args)

    # (1, b_pad) is in batch order along lanes -> drop padding, back to (B, 1).
    return out.reshape(b_pad)[:B][:, None]


def init_params(key, input_size, h1, h2, h3, output_size):
    """Deterministic init mimicking PyTorch nn.Linear default (uniform +/- 1/sqrt(fan_in)).

    Weights stored PyTorch-style as (out_features, in_features); biases as (out, 1).
    """
    sizes = [(input_size, h1), (h1, h2), (h2, h3), (h3, output_size)]
    params = {}
    for i, (fan_in, fan_out) in enumerate(sizes, start=1):
        key, kw, kb = jax.random.split(key, 3)
        bound = 1.0 / jnp.sqrt(jnp.float32(fan_in))
        params[f"w{i}"] = jax.random.uniform(
            kw, (fan_out, fan_in), jnp.float32, minval=-bound, maxval=bound)
        params[f"b{i}"] = jax.random.uniform(
            kb, (fan_out, 1), jnp.float32, minval=-bound, maxval=bound)
    return params


def reference_forward(state, params):
    """Plain-JAX reference for correctness check (standard batch-major math)."""
    h = jnp.maximum(state @ params["w1"].T + params["b1"].T, 0.0)
    h = jnp.maximum(h @ params["w2"].T + params["b2"].T, 0.0)
    h = jnp.maximum(h @ params["w3"].T + params["b3"].T, 0.0)
    return h @ params["w4"].T + params["b4"].T


# TODO(synk): Adam optimizer construction and save()/state_dict checkpointing from the
# PyTorch module are training/IO utilities with no forward-pass Pallas equivalent.

if __name__ == "__main__":
    # Small shapes consistent with CriticalNetwork(input_size, h1, h2, h3, output_size, lr)
    batch = 8
    input_size, hidden1, hidden2, hidden3, output_size = 16, 32, 32, 16, 1

    key = jax.random.PRNGKey(0)
    key, k_state = jax.random.split(key)
    state = jax.random.normal(k_state, (batch, input_size), dtype=jnp.float32)
    params = init_params(key, input_size, hidden1, hidden2, hidden3, output_size)

    value = critical_network_forward(state, params)
    value = jax.block_until_ready(value)

    ref = reference_forward(state, params)
    assert value.shape == (batch, output_size)
    assert jnp.allclose(value, ref, atol=1e-5, rtol=1e-5), "mismatch vs reference"

    # Second check: non-aligned batch exercises the padding + slice path.
    key, k_state2 = jax.random.split(key)
    state2 = jax.random.normal(k_state2, (200, input_size), dtype=jnp.float32)
    value2 = jax.block_until_ready(critical_network_forward(state2, params))
    ref2 = reference_forward(state2, params)
    assert value2.shape == (200, output_size)
    assert jnp.allclose(value2, ref2, atol=1e-5, rtol=1e-5), "mismatch vs reference (ragged)"

    # Third check: batch > 256 exercises the multi-tile (num_tiles >= 2) path.
    key, k_state3 = jax.random.split(key)
    state3 = jax.random.normal(k_state3, (1100, input_size), dtype=jnp.float32)
    value3 = jax.block_until_ready(critical_network_forward(state3, params))
    ref3 = reference_forward(state3, params)
    assert value3.shape == (1100, output_size)
    assert jnp.allclose(value3, ref3, atol=1e-5, rtol=1e-5), "mismatch vs reference (multi-tile)"

    print("KERNEL_OK")
</pallas_src>

<mosaic_0001>
module attributes {stable_mosaic.version = 11 : i64} {
  func.func @critic_mlp_kernel(%arg0: i32, %arg1: memref<16x128xf32, #tpu.memory_space<vmem>>, %arg2: memref<32x16xf32, #tpu.memory_space<vmem>>, %arg3: memref<32x1xf32, #tpu.memory_space<vmem>>, %arg4: memref<32x32xf32, #tpu.memory_space<vmem>>, %arg5: memref<32x1xf32, #tpu.memory_space<vmem>>, %arg6: memref<16x32xf32, #tpu.memory_space<vmem>>, %arg7: memref<16x1xf32, #tpu.memory_space<vmem>>, %arg8: memref<1x16xf32, #tpu.memory_space<vmem>>, %arg9: memref<1x1xf32, #tpu.memory_space<vmem>>, %arg10: memref<1x128xf32, #tpu.memory_space<vmem>>) attributes {dimension_semantics = [#tpu.dimension_semantics<parallel>], iteration_bounds = array<i64: 1>, scalar_prefetch = 0 : i64, scratch_operands = 0 : i64, tpu.core_type = #tpu.core_type<tc>, window_params = [{transform_indices = @transform_0, window_bounds = array<i64: 16, 128>}, {pipeline_mode = #tpu.pipeline_mode<synchronous>, transform_indices = @transform_1, window_bounds = array<i64: 32, 16>}, {pipeline_mode = #tpu.pipeline_mode<synchronous>, transform_indices = @transform_2, window_bounds = array<i64: 32, 1>}, {pipeline_mode = #tpu.pipeline_mode<synchronous>, transform_indices = @transform_3, window_bounds = array<i64: 32, 32>}, {pipeline_mode = #tpu.pipeline_mode<synchronous>, transform_indices = @transform_4, window_bounds = array<i64: 32, 1>}, {pipeline_mode = #tpu.pipeline_mode<synchronous>, transform_indices = @transform_5, window_bounds = array<i64: 16, 32>}, {pipeline_mode = #tpu.pipeline_mode<synchronous>, transform_indices = @transform_6, window_bounds = array<i64: 16, 1>}, {pipeline_mode = #tpu.pipeline_mode<synchronous>, transform_indices = @transform_7, window_bounds = array<i64: 1, 16>}, {pipeline_mode = #tpu.pipeline_mode<synchronous>, transform_indices = @transform_8, window_bounds = array<i64: 1, 1>}, {transform_indices = @transform_9, window_bounds = array<i64: 1, 128>}]} {
    %c0 = arith.constant 0 : index
    %c0_0 = arith.constant 0 : index
    %0 = vector.load %arg1[%c0, %c0_0] : memref<16x128xf32, #tpu.memory_space<vmem>>, vector<16x128xf32>
    %c0_1 = arith.constant 0 : index
    %c0_2 = arith.constant 0 : index
    %1 = vector.load %arg2[%c0_1, %c0_2] : memref<32x16xf32, #tpu.memory_space<vmem>>, vector<32x16xf32>
    %cst = arith.constant dense<0.000000e+00> : vector<32x128xf32>
    %2 = tpu.matmul %1, %0, %cst {dimension_numbers = #tpu.dot_dimension_numbers<[1], [0], [0], [1], [0, 0, 1, 1], [], []>} : vector<32x16xf32>, vector<16x128xf32>, vector<32x128xf32> -> vector<32x128xf32>
    %c0_3 = arith.constant 0 : index
    %c0_4 = arith.constant 0 : index
    %3 = vector.load %arg3[%c0_3, %c0_4] : memref<32x1xf32, #tpu.memory_space<vmem>>, vector<32x1xf32>
    %4 = vector.broadcast %3 : vector<32x1xf32> to vector<32x128xf32>
    %5 = arith.addf %2, %4 : vector<32x128xf32>
    %cst_5 = arith.constant 0.000000e+00 : f32
    %6 = vector.broadcast %cst_5 : f32 to vector<32x128xf32>
    %7 = arith.maximumf %5, %6 : vector<32x128xf32>
    %c0_6 = arith.constant 0 : index
    %c0_7 = arith.constant 0 : index
    %8 = vector.load %arg4[%c0_6, %c0_7] : memref<32x32xf32, #tpu.memory_space<vmem>>, vector<32x32xf32>
    %cst_8 = arith.constant dense<0.000000e+00> : vector<32x128xf32>
    %9 = tpu.matmul %8, %7, %cst_8 {dimension_numbers = #tpu.dot_dimension_numbers<[1], [0], [0], [1], [0, 0, 1, 1], [], []>} : vector<32x32xf32>, vector<32x128xf32>, vector<32x128xf32> -> vector<32x128xf32>
    %c0_9 = arith.constant 0 : index
    %c0_10 = arith.constant 0 : index
    %10 = vector.load %arg5[%c0_9, %c0_10] : memref<32x1xf32, #tpu.memory_space<vmem>>, vector<32x1xf32>
    %11 = vector.broadcast %10 : vector<32x1xf32> to vector<32x128xf32>
    %12 = arith.addf %9, %11 : vector<32x128xf32>
    %cst_11 = arith.constant 0.000000e+00 : f32
    %13 = vector.broadcast %cst_11 : f32 to vector<32x128xf32>
    %14 = arith.maximumf %12, %13 : vector<32x128xf32>
    %c0_12 = arith.constant 0 : index
    %c0_13 = arith.constant 0 : index
    %15 = vector.load %arg6[%c0_12, %c0_13] : memref<16x32xf32, #tpu.memory_space<vmem>>, vector<16x32xf32>
    %cst_14 = arith.constant dense<0.000000e+00> : vector<16x128xf32>
    %16 = tpu.matmul %15, %14, %cst_14 {dimension_numbers = #tpu.dot_dimension_numbers<[1], [0], [0], [1], [0, 0, 1, 1], [], []>} : vector<16x32xf32>, vector<32x128xf32>, vector<16x128xf32> -> vector<16x128xf32>
    %c0_15 = arith.constant 0 : index
    %c0_16 = arith.constant 0 : index
    %17 = vector.load %arg7[%c0_15, %c0_16] : memref<16x1xf32, #tpu.memory_space<vmem>>, vector<16x1xf32>
    %18 = vector.broadcast %17 : vector<16x1xf32> to vector<16x128xf32>
    %19 = arith.addf %16, %18 : vector<16x128xf32>
    %cst_17 = arith.constant 0.000000e+00 : f32
    %20 = vector.broadcast %cst_17 : f32 to vector<16x128xf32>
    %21 = arith.maximumf %19, %20 : vector<16x128xf32>
    %c0_18 = arith.constant 0 : index
    %c0_19 = arith.constant 0 : index
    %22 = vector.load %arg8[%c0_18, %c0_19] : memref<1x16xf32, #tpu.memory_space<vmem>>, vector<1x16xf32>
    %cst_20 = arith.constant dense<0.000000e+00> : vector<1x128xf32>
    %23 = tpu.matmul %22, %21, %cst_20 {dimension_numbers = #tpu.dot_dimension_numbers<[1], [0], [0], [1], [0, 0, 1, 1], [], []>} : vector<1x16xf32>, vector<16x128xf32>, vector<1x128xf32> -> vector<1x128xf32>
    %c0_21 = arith.constant 0 : index
    %c0_22 = arith.constant 0 : index
    %24 = vector.load %arg9[%c0_21, %c0_22] : memref<1x1xf32, #tpu.memory_space<vmem>>, vector<1x1xf32>
    %25 = vector.broadcast %24 : vector<1x1xf32> to vector<1x128xf32>
    %26 = arith.addf %23, %25 : vector<1x128xf32>
    %c0_23 = arith.constant 0 : index
    %c0_24 = arith.constant 0 : index
    %27 = vector.load %arg10[%c0_23, %c0_24] : memref<1x128xf32, #tpu.memory_space<vmem>>, vector<1x128xf32>
    tpu.vector_store %arg10[%c0_23, %c0_24], %26 {strides = array<i32>} : memref<1x128xf32, #tpu.memory_space<vmem>>, vector<1x128xf32>,
    return
  }
  func.func @transform_0(%arg0: i32) -> (i32, i32) {
    %c0_i32 = arith.constant 0 : i32
    %c0_i32_0 = arith.constant 0 : i32
    return %c0_i32, %arg0 : i32, i32
  }
  func.func @transform_1(%arg0: i32) -> (i32, i32) {
    %c0_i32 = arith.constant 0 : i32
    %c0_i32_0 = arith.constant 0 : i32
    %c0_i32_1 = arith.constant 0 : i32
    return %c0_i32, %c0_i32_0 : i32, i32
  }
  func.func @transform_2(%arg0: i32) -> (i32, i32) {
    %c0_i32 = arith.constant 0 : i32
    %c0_i32_0 = arith.constant 0 : i32
    %c0_i32_1 = arith.constant 0 : i32
    return %c0_i32, %c0_i32_0 : i32, i32
  }
  func.func @transform_3(%arg0: i32) -> (i32, i32) {
    %c0_i32 = arith.constant 0 : i32
    %c0_i32_0 = arith.constant 0 : i32
    %c0_i32_1 = arith.constant 0 : i32
    return %c0_i32, %c0_i32_0 : i32, i32
  }
  func.func @transform_4(%arg0: i32) -> (i32, i32) {
    %c0_i32 = arith.constant 0 : i32
    %c0_i32_0 = arith.constant 0 : i32
    %c0_i32_1 = arith.constant 0 : i32
    return %c0_i32, %c0_i32_0 : i32, i32
  }
  func.func @transform_5(%arg0: i32) -> (i32, i32) {
    %c0_i32 = arith.constant 0 : i32
    %c0_i32_0 = arith.constant 0 : i32
    %c0_i32_1 = arith.constant 0 : i32
    return %c0_i32, %c0_i32_0 : i32, i32
  }
  func.func @transform_6(%arg0: i32) -> (i32, i32) {
    %c0_i32 = arith.constant 0 : i32
    %c0_i32_0 = arith.constant 0 : i32
    %c0_i32_1 = arith.constant 0 : i32
    return %c0_i32, %c0_i32_0 : i32, i32
  }
  func.func @transform_7(%arg0: i32) -> (i32, i32) {
    %c0_i32 = arith.constant 0 : i32
    %c0_i32_0 = arith.constant 0 : i32
    %c0_i32_1 = arith.constant 0 : i32
    return %c0_i32, %c0_i32_0 : i32, i32
  }
  func.func @transform_8(%arg0: i32) -> (i32, i32) {
    %c0_i32 = arith.constant 0 : i32
    %c0_i32_0 = arith.constant 0 : i32
    %c0_i32_1 = arith.constant 0 : i32
    return %c0_i32, %c0_i32_0 : i32, i32
  }
  func.func @transform_9(%arg0: i32) -> (i32, i32) {
    %c0_i32 = arith.constant 0 : i32
    %c0_i32_0 = arith.constant 0 : i32
    return %c0_i32, %arg0 : i32, i32
  }
}

</mosaic_0001>

<bundles_post_ra>
// kernel: tpu_custom_call.1
= control target key start
LH: loop header
LB: loop body
LE: loop exit
PB: predicated region body
PF: predicated region fallthrough
CT: control target
= control target key end

     0   :  { %s773_s0 = inlined_call_operand.vmem [shape: f32[16,128], index: 0, kind: input, shape index: {}]   ;;  %s774_s1 = inlined_call_operand.vmem [shape: f32[32,16], index: 1, kind: input, shape index: {}]   ;;  %s775_s2 = inlined_call_operand.vmem [shape: f32[32,1], index: 2, kind: input, shape index: {}]   ;;  %s776_s3 = inlined_call_operand.vmem [shape: f32[32,32], index: 3, kind: input, shape index: {}]   ;;  %s777_s4 = inlined_call_operand.vmem [shape: f32[32,1], index: 4, kind: input, shape index: {}]   ;;  %s778_s5 = inlined_call_operand.vmem [shape: f32[16,32], index: 5, kind: input, shape index: {}]   ;;  %s779_s6 = inlined_call_operand.vmem [shape: f32[16,1], index: 6, kind: input, shape index: {}]   ;;  %s780_s7 = inlined_call_operand.vmem [shape: f32[1,16], index: 7, kind: input, shape index: {}]   ;;  %s781_s8 = inlined_call_operand.<no memory space> [shape: f32[1,1], index: 8, kind: input, shape index: {}]   ;;  %s782_s9 = inlined_call_operand.hbm [shape: f32[1,128], index: 9, kind: output, shape index: {}]  }
   0x1   :  { %v14_v0 = vstv %s781_s8 }
   0x2   :  { %15 = vst [vmem:[#allocation2] sm:$0x1] %v14_v0 }
   0x3   :  { %v35_v1 = vld [vmem:[%s773_s0] sm:$0xff]  ;;  %v36_v2 = vld [vmem:[%s773_s0 + $0x8] sm:$0xff]  ;;  %vm65_vm0 = vcmask 130048   ;;  %v623_v5 = vmov 0   ;;  %v43_v7 = vld [vmem:[%s775_s2 + $0x10] sm:$0xff] }
   0x4   :  { %v37_v3 = vld [vmem:[%s774_s1] sm:$0xff]  ;;  %v569_v4 = vpack.c.bf16 %v36_v2, %v35_v1  ;;  %597 = vset.pattern.permute.xlu0 %v623_v5  ;;  %598 = vset.pattern.permute.xlu1 %v623_v5  ;;  %v38_v8 = vld [vmem:[%s774_s1 + $0x8] sm:$0xff]  ;;  %v39_v10 = vld [vmem:[%s774_s1 + $0x10] sm:$0xff] }
   0x5   :  { %531 = vmatprep.mubr.msk.f32.mxu0 %vm65_vm0, %v37_v3  ;;  %v41_v6 = vld [vmem:[%s775_s2] sm:$0xff]  ;;  %v42_v9 = vld [vmem:[%s775_s2 + $0x8] sm:$0xff]  ;;  %57 = vperm.xlu1 %598, %v43_v7   ;;  %v44_v11 = vld [vmem:[%s775_s2 + $0x18] sm:$0xff] }
   0x6   :  { %570 = vmatprep.subr.bf16.mxu0 %v569_v4  ;;  %47 = vperm.xlu0 %597, %v41_v6  }
   0x7   :  { %572 = vmatpush3.bf16.msra.mxu0 %v569_v4 }
   0x8   :  { %16 = vsyncpa [#allocation4], 0  ;;  %v40_v12 = vld [vmem:[%s774_s1 + $0x18] sm:$0xff]  ;;  %v171_v13 = vld [vmem:[%s777_s4] sm:$0xff]  ;;  %vm195_vm1 = vcmask 261120   ;;  %v624_v62 = vmov 0.0|0.0  }
   0x9   :  { %62 = vperm.xlu1 %598, %v44_v11   ;;  %v172_v14 = vld [vmem:[%s777_s4 + $0x8] sm:$0xff]  ;;  %v173_v15 = vld [vmem:[%s777_s4 + $0x10] sm:$0xff]  ;;  %v174_v16 = vld [vmem:[%s777_s4 + $0x18] sm:$0xff]  ;;  %vm625_vm2 = vmmov 0   ;;  %v626_v63 = vmov 0.0  }
   0xa   :  { %532 = vmatmul.mubr.msk.f32.vlgmr.msra.gmra.mrb[0].mxu0 %vm65_vm0, %v38_v8  ;;  %52 = vperm.xlu0 %597, %v42_v9   ;;  %v299_v17 = vld [vmem:[%s779_s6] sm:$0xff]  ;;  %v300_v18 = vld [vmem:[%s779_s6 + $0x8] sm:$0xff]  ;;  %v169_v40 = vld [vmem:[%s776_s3 + $0x10] sm:$0xff] }
   0xb   :  { %534 = vmatprep.mubr.msk.f32.mxu0 %vm65_vm0, %v39_v10  ;;  %v395_v19 = vld [vmem:[#allocation2] sm:$0x1]  ;;  %v168_v39 = vld [vmem:[%s776_s3 + $0x8] sm:$0xff]  ;;  %v170_v41 = vld [vmem:[%s776_s3 + $0x18] sm:$0xff]  ;;  %v401_v10 = vlaneseq }
   0xc   :  { %v167_v20 = vld [vmem:[%s776_s3] sm:$0xff]  ;;  %v298_v61 = vld [vmem:[%s778_s5 + $0x8] sm:$0xff] }
   0xd   :  { %182 = vperm.xlu1 %598, %v172_v14   ;;  %545 = vmatprep.mubr.msk.f32.mxu1 %vm195_vm1, %v167_v20  ;;  %v297_v42 = vld [vmem:[%s778_s5] sm:$0xff]  ;;  %v402_v11 = vshrl.u32 %v401_v10, 7  ;;  %s627_s5 = smov [#allocation3]  }
   0xe   :  { %535 = vmatmul.mubr.msk.f32.gmra.mrb[2].mxu0 %vm65_vm0, %v40_v12  ;;  %177 = vperm.xlu0 %597, %v171_v13   ;;  %v394_v9 = vld [vmem:[%s780_s7] sm:$0x1]  ;;  %s485_s27 = sshll.u32 %s627_s5, 4  ;;  %s486_s27 = int_to_ptr.vmem [resolvable:$true] %s485_s27 }
   0xf   :  { %559 = vmatprep.mubr.msk.f32.mxu0 %vm195_vm1, %v297_v42  ;;  %v403_v12 = vsub.s32 0, %v402_v11  ;;  %s599_s28 = scalar_lea.vmem %s486_s27, 16  ;;  %s603_s29 = scalar_lea.vmem %s486_s27, 32 }
  0x10   :  { %p600_p0 = scmp.ne.s32.totalorder %s486_s27, %s599_s28  ;;  %p604_p1 = scmp.lt.s32.totalorder %s486_s27, %s486_s27 }
  0x11   :  { %192 = vperm.xlu1 %598, %v174_v16   ;;  %p605_p2 = scmp.lt.s32.totalorder %s603_s29, %s599_s28 }
  0x12   :  { %187 = vperm.xlu0 %597, %v173_v15  }
  0x13   :  { %p606_p3 = por %p605_p2, %p604_p1 }
  0x15   :  { %308 = vperm.xlu1 %598, %v300_v18   ;;  %p607_p4 = pnand %p606_p3, %p600_p0 }
  0x16   :  { %303 = vperm.xlu0 %597, %v299_v17  }
  0x1a   :  { %398 = vperm.xlu0 %597, %v395_v19  }
  0x84   :  { %v58_v22 = vpop.permute.xlu1 %57 }
  0x85   :  { %v48_v21 = vpop.permute.xlu0 %47 }
  0x88   :  { %v63_v29 = vpop.permute.xlu1 %62 }
  0x89   :  { %v53_v23 = vpop.permute.xlu0 %52 }
  0x8c   :  { %v183_v43 = vpop.permute.xlu1 %182 }
  0x8d   :  { %v178_v44 = vpop.permute.xlu0 %177 }
  0x90   :  { %v193_v50 = vpop.permute.xlu1 %192 }
  0x91   :  { %v188_v53 = vpop.permute.xlu0 %187 }
  0x94   :  { %v309_v0 = vpop.permute.xlu1 %308 }
  0x95   :  { %v304_v2 = vpop.permute.xlu0 %303 }
  0x99   :  { %v399_v13 = vpop.permute.xlu0 %398 }
  0x9a   :  { %v404_v14 = vrot.slane %v399_v13, %v403_v12 }
  0xdd   :  { %v533_v24 = vpop.f32.mrb[0].mxu0 }
  0xde   :  { %v150_v25 = vadd.f32 %v533_v24, %v53_v23  ;;  %v144_v26 = vpop.f32.mrb[1].mxu0 }
  0xdf   :  { %v145_v27 = vadd.f32 %v144_v26, %v48_v21 }
  0xe0   :  { %v164_v28 = vmax.f32 %v150_v25, 0.0 }
  0xe1   :  { %v163_v30 = vmax.f32 %v145_v27, 0.0  ;;  %v536_v31 = vpop.f32.mrb[2].mxu0 }
  0xe2   :  { %v160_v32 = vadd.f32 %v536_v31, %v63_v29  ;;  %v154_v33 = vpop.f32.mrb[3].mxu0 }
  0xe3   :  { %v155_v34 = vadd.f32 %v154_v33, %v58_v22  ;;  %v573_v35 = vpack.c.bf16 %v164_v28, %v163_v30 }
  0xe4   :  { %v166_v36 = vmax.f32 %v160_v32, 0.0 }
  0xe5   :  { %v165_v37 = vmax.f32 %v155_v34, 0.0  ;;  %574 = vmatprep.subr.bf16.mxu1 %v573_v35 }
  0xe6   :  { %576 = vmatpush3.bf16.msra.mxu1 %v573_v35 }
  0xe7   :  { %v577_v38 = vpack.c.bf16 %v166_v36, %v165_v37 }
  0xe9   :  { %578 = vmatprep.subr.bf16.mxu1 %v577_v38 }
  0xea   :  { %580 = vmatpush3.bf16.msra.mxu1 %v577_v38 }
  0xed   :  { %546 = vmatmul.mubr.msk.f32.vlgmr.msra.gmra.mrb[0].mxu1 %vm195_vm1, %v168_v39 }
  0xee   :  { %548 = vmatprep.mubr.msk.f32.mxu1 %vm195_vm1, %v169_v40 }
  0xf1   :  { %549 = vmatmul.mubr.msk.f32.gmra.mrb[2].mxu1 %vm195_vm1, %v170_v41 }
 0x1c0   :  { %v547_v45 = vpop.f32.mrb[0].mxu1 }
 0x1c1   :  { %v280_v46 = vadd.f32 %v547_v45, %v183_v43  ;;  %v274_v47 = vpop.f32.mrb[1].mxu1 }
 0x1c2   :  { %v275_v48 = vadd.f32 %v274_v47, %v178_v44 }
 0x1c3   :  { %v294_v49 = vmax.f32 %v280_v46, 0.0 }
 0x1c4   :  { %v293_v51 = vmax.f32 %v275_v48, 0.0  ;;  %v550_v52 = vpop.f32.mrb[2].mxu1 }
 0x1c5   :  { %v290_v54 = vadd.f32 %v550_v52, %v193_v50  ;;  %v284_v55 = vpop.f32.mrb[3].mxu1 }
 0x1c6   :  { %v581_v56 = vpack.c.bf16 %v294_v49, %v293_v51  ;;  %v285_v57 = vadd.f32 %v284_v55, %v188_v53 }
 0x1c7   :  { %v296_v58 = vmax.f32 %v290_v54, 0.0 }
 0x1c8   :  { %v295_v59 = vmax.f32 %v285_v57, 0.0  ;;  %582 = vmatprep.subr.bf16.mxu0 %v581_v56 }
 0x1c9   :  { %584 = vmatpush3.bf16.msra.mxu0 %v581_v56 }
 0x1ca   :  { %v585_v60 = vpack.c.bf16 %v296_v58, %v295_v59 }
 0x1cc   :  { %586 = vmatprep.subr.bf16.mxu0 %v585_v60 }
 0x1cd   :  { %588 = vmatpush3.bf16.msra.mxu0 %v585_v60 }
 0x1ce   :  { %589 = vmatprep.subr.bf16.mxu0 %v624_v62 }
 0x1d0   :  { %560 = vmatmul.mubr.msk.f32.vlgmr.msra.gmra.mrb[4].mxu0 %vm195_vm1, %v298_v61 }
 0x1d1   :  { %566 = vmatprep.mubr.msk.f32.mxu0 %vm625_vm2, %v626_v63 }
 0x2a3   :  { %v561_v1 = vpop.f32.mrb[4].mxu0 }
 0x2a4   :  { %v389_v3 = vadd.f32 %v561_v1, %v309_v0  ;;  %v383_v4 = vpop.f32.mrb[5].mxu0 }
 0x2a5   :  { %v384_v5 = vadd.f32 %v383_v4, %v304_v2 }
 0x2a6   :  { %v393_v6 = vmax.f32 %v389_v3, 0.0 }
 0x2a7   :  { %v392_v7 = vmax.f32 %v384_v5, 0.0 }
 0x2a9   :  { %v590_v8 = vpack.c.bf16 %v393_v6, %v392_v7 }
 0x2ab   :  { %591 = vmatpush3.bf16.msra.mxu0 %v590_v8 }
 0x2ae   :  { %567 = vmatmul.mubr.msk.f32.vlgmr.msra.gmra.mrb[6].mxu0 %vm65_vm0, %v394_v9 }
 0x381   :  { %v474_v15 = vpop.f32.mrb[6].mxu0 }
 0x382   :  { %v475_v16 = vadd.f32 %v474_v15, %v404_v14  ;;  %v568_v17 = vpop.f32.mrb[7].mxu0 }
 0x384   :  { %478 = vst [vmem:[#allocation3] sm:$0x1] %v475_v16 }
 0x385   :  { %610 = shalt.err (!%p607_p4)
}
 0x386   :  { %s611_s10 = scalar_lea.hbm %s782_s9, 16 }
 0x387   :  { %p612_p5 = scmp.ne.s32.totalorder %s782_s9, %s611_s10  ;;  %p615_p6 = scmp.lt.u32.totalorder %s611_s10, %s782_s9 }
 0x389   :  { %p617_p7 = pnand %p615_p6, %p612_p5 }
 0x38b   :  { %620 = shalt.err (!%p617_p7)
}
 0x38c   :  { %488 = dma.vmem_to_hbm [thread:$0]  %s486_s27, 16, %s782_s9, [#allocation4]  }
 0x38d   :  { %621 = dma.done.wait [#allocation4], 16  }
 0x38e   :  { %622 = vsyncadd [#allocation4], 4294967280 }
 0x38f   :  { %492 = vsyncpa [#allocation4], 1 }

</bundles_post_ra>
